<compile_context>
chip_gen: v7x
topology: tpu7x:2x2x1
jax: 0.10.0
libtpu: 0.0.40
codegen_flags: <defaults>
</compile_context>

<pallas_src>
import functools

import jax
import jax.numpy as jnp
from jax.experimental import pallas as pl
from jax.experimental.pallas import tpu as pltpu

_BN_EPS = 1e-5


def _bn_relu_fused(h, gamma, beta, eps=_BN_EPS):
    """Train-mode BN + ReLU, single reduction pass, folded affine (all f32)."""
    mean = jnp.mean(h, axis=0, keepdims=True)
    mean_sq = jnp.mean(h * h, axis=0, keepdims=True)
    var = jnp.maximum(mean_sq - mean * mean, 0.0)        # biased variance
    scale = gamma * jax.lax.rsqrt(var + eps)             # EUP rsqrt
    shift = beta - mean * scale
    return jnp.maximum(h * scale + shift, 0.0)


def _projection_head_kernel(
    x_ref,
    w1_ref, g1_ref, be1_ref,
    w2_ref, g2_ref, be2_ref,
    w3_ref, b3_ref,
    o_ref,
    h1_ref,                       # persistent VMEM scratch (B, hidden), f32
    *, tb, compute_dtype,
):
    ti = pl.program_id(0)

    # ---- streamed part: layer-1 GEMM on this batch tile --------------------
    # (b1 dropped: bias + train-mode BN cancels exactly)
    h1_tile = jnp.dot(x_ref[...], w1_ref[...], preferred_element_type=jnp.float32)
    row0 = pl.multiple_of(ti * tb, tb)
    h1_ref[pl.ds(row0, tb), :] = h1_tile

    # ---- epilogue on the last tile: BN1 -> L2 -> BN2 -> L3 -----------------
    @pl.when(ti == pl.num_programs(0) - 1)
    def _():
        h1 = h1_ref[...]
        a1 = _bn_relu_fused(h1, g1_ref[...], be1_ref[...])
        h2 = jnp.dot(a1.astype(compute_dtype), w2_ref[...],
                     preferred_element_type=jnp.float32)          # b2 dropped
        a2 = _bn_relu_fused(h2, g2_ref[...], be2_ref[...])
        out = jnp.dot(a2.astype(compute_dtype), w3_ref[...],
                      preferred_element_type=jnp.float32) + b3_ref[...]
        o_ref[...] = out.astype(o_ref.dtype)


def _pick_batch_tile(batch):
    for tb in (1024, 512, 256, 128, 64, 32, 16, 8):
        if batch % tb == 0:
            return tb
    return batch


def simclr_projection_head(x, params, *, compute_dtype=jnp.bfloat16, batch_tile=None):
    (w1, b1, g1, be1, w2, b2, g2, be2, w3, b3) = params
    del b1, b2  # exactly cancelled by the train-mode BatchNorm that follows

    B, in_features = x.shape
    hidden = w1.shape[1]
    h2dim = w2.shape[1]
    out_dim = w3.shape[1]

    tb = batch_tile if batch_tile is not None else _pick_batch_tile(B)
    assert B % tb == 0, "batch must be divisible by the batch tile"
    grid = (B // tb,)

    # Cast MXU operands (bf16 is native on v6e/v7x MXU; halves x HBM traffic).
    xc = x.astype(compute_dtype)
    w1c = w1.astype(compute_dtype)
    w2c = w2.astype(compute_dtype)
    w3c = w3.astype(compute_dtype)

    itemsize = jnp.dtype(compute_dtype).itemsize
    # VMEM budget: double-buffered x tile + (conservatively doubled) weights /
    # BN params + resident h1 scratch + output block + headroom.
    est = (2 * tb * in_features * itemsize
           + 2 * (in_features * hidden + hidden * h2dim + h2dim * out_dim) * itemsize
           + 2 * (2 * hidden + 2 * h2dim + out_dim) * 4
           + B * hidden * 4
           + 2 * B * out_dim * 4)
    vmem_limit = max(est + (8 << 20), 32 << 20)
    try:
        vmem_cap = pltpu.get_tpu_info().vmem_capacity_bytes
    except Exception:
        vmem_cap = 64 << 20          # assume the tightest chip (v7x per-TC)
    vmem_limit = int(min(vmem_limit, int(vmem_cap * 0.9)))

    flops = 2 * B * (in_features * hidden + hidden * h2dim + h2dim * out_dim)
    bytes_accessed = (xc.size * itemsize
                      + (w1c.size + w2c.size + w3c.size) * itemsize
                      + (g1.size + be1.size + g2.size + be2.size + b3.size) * 4
                      + B * out_dim * 4)

    kernel = functools.partial(_projection_head_kernel, tb=tb,
                               compute_dtype=compute_dtype)

    def resident(a):
        # whole array, same block for every grid step -> stays in VMEM
        return pl.BlockSpec(a.shape, lambda i: (0, 0))

    grid_spec = pltpu.PrefetchScalarGridSpec(
        num_scalar_prefetch=0,
        grid=grid,
        in_specs=[
            pl.BlockSpec((tb, in_features), lambda i: (i, 0)),   # x: streamed
            resident(w1c), resident(g1), resident(be1),
            resident(w2c), resident(g2), resident(be2),
            resident(w3c), resident(b3),
        ],
        out_specs=pl.BlockSpec((B, out_dim), lambda i: (0, 0)),
        scratch_shapes=[pltpu.VMEM((B, hidden), jnp.float32)],
    )

    return pl.pallas_call(
        kernel,
        out_shape=jax.ShapeDtypeStruct((B, out_dim), jnp.float32),
        grid_spec=grid_spec,
        compiler_params=pltpu.CompilerParams(
            # BN couples the batch axis, so it must be "arbitrary".
            # TODO(synk): if the caller has >1 independent SimCLR view, add a
            # leading "parallel" axis over views to engage v7x's second TC.
            dimension_semantics=("arbitrary",),
            vmem_limit_bytes=vmem_limit,
        ),
        cost_estimate=pl.CostEstimate(
            flops=flops,
            transcendentals=hidden + h2dim,
            bytes_accessed=bytes_accessed,
        ),
    )(xc, w1c, g1, be1, w2c, g2, be2, w3c, b3)


def init_params(key, in_features, hidden_dim=512, out_dim=128):
    """Linear weights stored as (in, out); BN affine params as (1, feat)."""
    h2 = hidden_dim // 2
    ks = jax.random.split(key, 6)

    def linear(kw, kb, fan_in, fan_out):
        bound = 1.0 / jnp.sqrt(jnp.float32(fan_in))
        w = jax.random.uniform(kw, (fan_in, fan_out), jnp.float32, -bound, bound)
        b = jax.random.uniform(kb, (1, fan_out), jnp.float32, -bound, bound)
        return w, b

    w1, b1 = linear(ks[0], ks[1], in_features, hidden_dim)
    w2, b2 = linear(ks[2], ks[3], hidden_dim, h2)
    w3, b3 = linear(ks[4], ks[5], h2, out_dim)
    g1 = jnp.ones((1, hidden_dim), jnp.float32)
    be1 = jnp.zeros((1, hidden_dim), jnp.float32)
    g2 = jnp.ones((1, h2), jnp.float32)
    be2 = jnp.zeros((1, h2), jnp.float32)
    return (w1, b1, g1, be1, w2, b2, g2, be2, w3, b3)


def reference_forward(x, params, *, compute_dtype=jnp.float32):
    """PyTorch-faithful forward (biases included, two-pass variance)."""
    (w1, b1, g1, be1, w2, b2, g2, be2, w3, b3) = params

    def mm(a, w):
        return jnp.dot(a.astype(compute_dtype), w.astype(compute_dtype),
                       preferred_element_type=jnp.float32)

    def bn_relu(h, g, be, eps=_BN_EPS):
        m = jnp.mean(h, axis=0, keepdims=True)
        v = jnp.mean((h - m) ** 2, axis=0, keepdims=True)   # biased (train mode)
        return jnp.maximum((h - m) * jax.lax.rsqrt(v + eps) * g + be, 0.0)

    h = bn_relu(mm(x, w1) + b1, g1, be1)
    h = bn_relu(mm(h, w2) + b2, g2, be2)
    return mm(h, w3) + b3


if __name__ == "__main__":
    key = jax.random.PRNGKey(0)
    k_x, k_p = jax.random.split(key)

    # Small shapes consistent with the module: batch=32, in_features=32,
    # hidden_dim=32 (hidden//2=16), out_dim=16.  batch_tile=16 -> 2 grid steps
    # so the streamed-tile + epilogue path is exercised.
    B, in_features, hidden_dim, out_dim = 32, 32, 32, 16

    x = jax.random.normal(k_x, (B, in_features), jnp.float32)
    params = init_params(k_p, in_features, hidden_dim=hidden_dim, out_dim=out_dim)

    # Strict numerical check with f32 MXU compute vs the PyTorch-faithful reference.
    out_f32 = jax.block_until_ready(
        simclr_projection_head(x, params, compute_dtype=jnp.float32, batch_tile=16))
    ref_f32 = reference_forward(x, params, compute_dtype=jnp.float32)
    assert out_f32.shape == (B, out_dim)
    assert jnp.allclose(out_f32, ref_f32, atol=1e-4, rtol=1e-4), "f32 mismatch vs reference"

    # Default bf16-MXU path (v6e/v7x-optimized); compare against a bf16-matmul reference.
    out_bf16 = jax.block_until_ready(
        simclr_projection_head(x, params, batch_tile=16))
    ref_bf16 = reference_forward(x, params, compute_dtype=jnp.bfloat16)
    assert jnp.allclose(out_bf16, ref_bf16, atol=5e-2, rtol=5e-2), "bf16 mismatch vs reference"

    print("KERNEL_OK")
</pallas_src>

<mosaic_0001>
module attributes {stable_mosaic.version = 11 : i64} {
  func.func @_projection_head_kernel(%arg0: i32, %arg1: memref<16x32xf32, #tpu.memory_space<vmem>>, %arg2: memref<32x32xf32, #tpu.memory_space<vmem>>, %arg3: memref<1x32xf32, #tpu.memory_space<vmem>>, %arg4: memref<1x32xf32, #tpu.memory_space<vmem>>, %arg5: memref<32x16xf32, #tpu.memory_space<vmem>>, %arg6: memref<1x16xf32, #tpu.memory_space<vmem>>, %arg7: memref<1x16xf32, #tpu.memory_space<vmem>>, %arg8: memref<16x16xf32, #tpu.memory_space<vmem>>, %arg9: memref<1x16xf32, #tpu.memory_space<vmem>>, %arg10: memref<32x16xf32, #tpu.memory_space<vmem>>, %arg11: memref<32x32xf32, #tpu.memory_space<vmem>>) attributes {dimension_semantics = [#tpu.dimension_semantics<arbitrary>], iteration_bounds = array<i64: 2>, scalar_prefetch = 0 : i64, scratch_operands = 1 : i64, tpu.core_type = #tpu.core_type<tc>, window_params = [{transform_indices = @transform_0, window_bounds = array<i64: 16, 32>}, {pipeline_mode = #tpu.pipeline_mode<synchronous>, transform_indices = @transform_1, window_bounds = array<i64: 32, 32>}, {pipeline_mode = #tpu.pipeline_mode<synchronous>, transform_indices = @transform_2, window_bounds = array<i64: 1, 32>}, {pipeline_mode = #tpu.pipeline_mode<synchronous>, transform_indices = @transform_3, window_bounds = array<i64: 1, 32>}, {pipeline_mode = #tpu.pipeline_mode<synchronous>, transform_indices = @transform_4, window_bounds = array<i64: 32, 16>}, {pipeline_mode = #tpu.pipeline_mode<synchronous>, transform_indices = @transform_5, window_bounds = array<i64: 1, 16>}, {pipeline_mode = #tpu.pipeline_mode<synchronous>, transform_indices = @transform_6, window_bounds = array<i64: 1, 16>}, {pipeline_mode = #tpu.pipeline_mode<synchronous>, transform_indices = @transform_7, window_bounds = array<i64: 16, 16>}, {pipeline_mode = #tpu.pipeline_mode<synchronous>, transform_indices = @transform_8, window_bounds = array<i64: 1, 16>}, {pipeline_mode = #tpu.pipeline_mode<synchronous>, transform_indices = @transform_9, window_bounds = array<i64: 32, 16>}]} {
    %c0 = arith.constant 0 : index
    %c0_0 = arith.constant 0 : index
    %0 = vector.load %arg1[%c0, %c0_0] : memref<16x32xf32, #tpu.memory_space<vmem>>, vector<16x32xf32>
    %c0_1 = arith.constant 0 : index
    %c0_2 = arith.constant 0 : index
    %1 = vector.load %arg2[%c0_1, %c0_2] : memref<32x32xf32, #tpu.memory_space<vmem>>, vector<32x32xf32>
    %cst = arith.constant dense<0.000000e+00> : vector<16x32xf32>
    %2 = tpu.matmul %0, %1, %cst {dimension_numbers = #tpu.dot_dimension_numbers<[1], [0], [0], [1], [0, 0, 1, 1], [], []>} : vector<16x32xf32>, vector<32x32xf32>, vector<16x32xf32> -> vector<16x32xf32>
    %c16_i32 = arith.constant 16 : i32
    %3 = arith.muli %arg0, %c16_i32 : i32
    %4 = tpu.assume_multiple %3, 16 : i32
    %5 = arith.index_cast %4 : i32 to index
    %c0_3 = arith.constant 0 : index
    %6 = vector.load %arg11[%5, %c0_3] : memref<32x32xf32, #tpu.memory_space<vmem>>, vector<16x32xf32>
    tpu.vector_store %arg11[%5, %c0_3], %2 {strides = array<i32>} : memref<32x32xf32, #tpu.memory_space<vmem>>, vector<16x32xf32>,
    %c1_i32 = arith.constant 1 : i32
    %7 = arith.cmpi eq, %arg0, %c1_i32 : i32
    %8 = arith.extui %7 : i1 to i32
    %c0_i32 = arith.constant 0 : i32
    %9 = arith.cmpi ne, %8, %c0_i32 : i32
    scf.if %9 {
      %c0_4 = arith.constant 0 : index
      %c0_5 = arith.constant 0 : index
      %10 = vector.load %arg11[%c0_4, %c0_5] : memref<32x32xf32, #tpu.memory_space<vmem>>, vector<32x32xf32>
      %c0_6 = arith.constant 0 : index
      %c0_7 = arith.constant 0 : index
      %11 = vector.load %arg3[%c0_6, %c0_7] : memref<1x32xf32, #tpu.memory_space<vmem>>, vector<1x32xf32>
      %c0_8 = arith.constant 0 : index
      %c0_9 = arith.constant 0 : index
      %12 = vector.load %arg4[%c0_8, %c0_9] : memref<1x32xf32, #tpu.memory_space<vmem>>, vector<1x32xf32>
      %cst_10 = arith.constant dense<0.000000e+00> : vector<32xf32>
      %13 = vector.multi_reduction <add>, %10, %cst_10 [0] : vector<32x32xf32> to vector<32xf32>
      %14 = vector.shape_cast %13 : vector<32xf32> to vector<1x32xf32>
      %cst_11 = arith.constant 3.200000e+01 : f32
      %15 = vector.broadcast %cst_11 : f32 to vector<1x32xf32>
      %16 = arith.divf %14, %15 : vector<1x32xf32>
      %17 = arith.mulf %10, %10 : vector<32x32xf32>
      %cst_12 = arith.constant dense<0.000000e+00> : vector<32xf32>
      %18 = vector.multi_reduction <add>, %17, %cst_12 [0] : vector<32x32xf32> to vector<32xf32>
      %19 = vector.shape_cast %18 : vector<32xf32> to vector<1x32xf32>
      %cst_13 = arith.constant 3.200000e+01 : f32
      %20 = vector.broadcast %cst_13 : f32 to vector<1x32xf32>
      %21 = arith.divf %19, %20 : vector<1x32xf32>
      %22 = arith.mulf %16, %16 : vector<1x32xf32>
      %23 = arith.subf %21, %22 : vector<1x32xf32>
      %cst_14 = arith.constant 0.000000e+00 : f32
      %24 = vector.broadcast %cst_14 : f32 to vector<1x32xf32>
      %25 = arith.maximumf %23, %24 : vector<1x32xf32>
      %cst_15 = arith.constant 9.99999974E-6 : f32
      %26 = vector.broadcast %cst_15 : f32 to vector<1x32xf32>
      %27 = arith.addf %25, %26 : vector<1x32xf32>
      %28 = math.rsqrt %27 : vector<1x32xf32>
      %29 = arith.mulf %11, %28 : vector<1x32xf32>
      %30 = arith.mulf %16, %29 : vector<1x32xf32>
      %31 = arith.subf %12, %30 : vector<1x32xf32>
      %32 = vector.broadcast %29 : vector<1x32xf32> to vector<32x32xf32>
      %33 = arith.mulf %10, %32 : vector<32x32xf32>
      %34 = vector.broadcast %31 : vector<1x32xf32> to vector<32x32xf32>
      %35 = arith.addf %33, %34 : vector<32x32xf32>
      %cst_16 = arith.constant 0.000000e+00 : f32
      %36 = vector.broadcast %cst_16 : f32 to vector<32x32xf32>
      %37 = arith.maximumf %35, %36 : vector<32x32xf32>
      %c0_17 = arith.constant 0 : index
      %c0_18 = arith.constant 0 : index
      %38 = vector.load %arg5[%c0_17, %c0_18] : memref<32x16xf32, #tpu.memory_space<vmem>>, vector<32x16xf32>
      %cst_19 = arith.constant dense<0.000000e+00> : vector<32x16xf32>
      %39 = tpu.matmul %37, %38, %cst_19 {dimension_numbers = #tpu.dot_dimension_numbers<[1], [0], [0], [1], [0, 0, 1, 1], [], []>} : vector<32x32xf32>, vector<32x16xf32>, vector<32x16xf32> -> vector<32x16xf32>
      %c0_20 = arith.constant 0 : index
      %c0_21 = arith.constant 0 : index
      %40 = vector.load %arg6[%c0_20, %c0_21] : memref<1x16xf32, #tpu.memory_space<vmem>>, vector<1x16xf32>
      %c0_22 = arith.constant 0 : index
      %c0_23 = arith.constant 0 : index
      %41 = vector.load %arg7[%c0_22, %c0_23] : memref<1x16xf32, #tpu.memory_space<vmem>>, vector<1x16xf32>
      %cst_24 = arith.constant dense<0.000000e+00> : vector<16xf32>
      %42 = vector.multi_reduction <add>, %39, %cst_24 [0] : vector<32x16xf32> to vector<16xf32>
      %43 = vector.shape_cast %42 : vector<16xf32> to vector<1x16xf32>
      %cst_25 = arith.constant 3.200000e+01 : f32
      %44 = vector.broadcast %cst_25 : f32 to vector<1x16xf32>
      %45 = arith.divf %43, %44 : vector<1x16xf32>
      %46 = arith.mulf %39, %39 : vector<32x16xf32>
      %cst_26 = arith.constant dense<0.000000e+00> : vector<16xf32>
      %47 = vector.multi_reduction <add>, %46, %cst_26 [0] : vector<32x16xf32> to vector<16xf32>
      %48 = vector.shape_cast %47 : vector<16xf32> to vector<1x16xf32>
      %cst_27 = arith.constant 3.200000e+01 : f32
      %49 = vector.broadcast %cst_27 : f32 to vector<1x16xf32>
      %50 = arith.divf %48, %49 : vector<1x16xf32>
      %51 = arith.mulf %45, %45 : vector<1x16xf32>
      %52 = arith.subf %50, %51 : vector<1x16xf32>
      %cst_28 = arith.constant 0.000000e+00 : f32
      %53 = vector.broadcast %cst_28 : f32 to vector<1x16xf32>
      %54 = arith.maximumf %52, %53 : vector<1x16xf32>
      %cst_29 = arith.constant 9.99999974E-6 : f32
      %55 = vector.broadcast %cst_29 : f32 to vector<1x16xf32>
      %56 = arith.addf %54, %55 : vector<1x16xf32>
      %57 = math.rsqrt %56 : vector<1x16xf32>
      %58 = arith.mulf %40, %57 : vector<1x16xf32>
      %59 = arith.mulf %45, %58 : vector<1x16xf32>
      %60 = arith.subf %41, %59 : vector<1x16xf32>
      %61 = vector.broadcast %58 : vector<1x16xf32> to vector<32x16xf32>
      %62 = arith.mulf %39, %61 : vector<32x16xf32>
      %63 = vector.broadcast %60 : vector<1x16xf32> to vector<32x16xf32>
      %64 = arith.addf %62, %63 : vector<32x16xf32>
      %cst_30 = arith.constant 0.000000e+00 : f32
      %65 = vector.broadcast %cst_30 : f32 to vector<32x16xf32>
      %66 = arith.maximumf %64, %65 : vector<32x16xf32>
      %c0_31 = arith.constant 0 : index
      %c0_32 = arith.constant 0 : index
      %67 = vector.load %arg8[%c0_31, %c0_32] : memref<16x16xf32, #tpu.memory_space<vmem>>, vector<16x16xf32>
      %cst_33 = arith.constant dense<0.000000e+00> : vector<32x16xf32>
      %68 = tpu.matmul %66, %67, %cst_33 {dimension_numbers = #tpu.dot_dimension_numbers<[1], [0], [0], [1], [0, 0, 1, 1], [], []>} : vector<32x16xf32>, vector<16x16xf32>, vector<32x16xf32> -> vector<32x16xf32>
      %c0_34 = arith.constant 0 : index
      %c0_35 = arith.constant 0 : index
      %69 = vector.load %arg9[%c0_34, %c0_35] : memref<1x16xf32, #tpu.memory_space<vmem>>, vector<1x16xf32>
      %70 = vector.broadcast %69 : vector<1x16xf32> to vector<32x16xf32>
      %71 = arith.addf %68, %70 : vector<32x16xf32>
      %c0_36 = arith.constant 0 : index
      %c0_37 = arith.constant 0 : index
      %72 = vector.load %arg10[%c0_36, %c0_37] : memref<32x16xf32, #tpu.memory_space<vmem>>, vector<32x16xf32>
      tpu.vector_store %arg10[%c0_36, %c0_37], %71 {strides = array<i32>} : memref<32x16xf32, #tpu.memory_space<vmem>>, vector<32x16xf32>,
    } else {
    }
    return
  }
  func.func @transform_0(%arg0: i32) -> (i32, i32) {
    %c0_i32 = arith.constant 0 : i32
    %c0_i32_0 = arith.constant 0 : i32
    return %arg0, %c0_i32 : i32, i32
  }
  func.func @transform_1(%arg0: i32) -> (i32, i32) {
    %c0_i32 = arith.constant 0 : i32
    %c0_i32_0 = arith.constant 0 : i32
    %c0_i32_1 = arith.constant 0 : i32
    return %c0_i32, %c0_i32_0 : i32, i32
  }
  func.func @transform_2(%arg0: i32) -> (i32, i32) {
    %c0_i32 = arith.constant 0 : i32
    %c0_i32_0 = arith.constant 0 : i32
    %c0_i32_1 = arith.constant 0 : i32
    return %c0_i32, %c0_i32_0 : i32, i32
  }
  func.func @transform_3(%arg0: i32) -> (i32, i32) {
    %c0_i32 = arith.constant 0 : i32
    %c0_i32_0 = arith.constant 0 : i32
    %c0_i32_1 = arith.constant 0 : i32
    return %c0_i32, %c0_i32_0 : i32, i32
  }
  func.func @transform_4(%arg0: i32) -> (i32, i32) {
    %c0_i32 = arith.constant 0 : i32
    %c0_i32_0 = arith.constant 0 : i32
    %c0_i32_1 = arith.constant 0 : i32
    return %c0_i32, %c0_i32_0 : i32, i32
  }
  func.func @transform_5(%arg0: i32) -> (i32, i32) {
    %c0_i32 = arith.constant 0 : i32
    %c0_i32_0 = arith.constant 0 : i32
    %c0_i32_1 = arith.constant 0 : i32
    return %c0_i32, %c0_i32_0 : i32, i32
  }
  func.func @transform_6(%arg0: i32) -> (i32, i32) {
    %c0_i32 = arith.constant 0 : i32
    %c0_i32_0 = arith.constant 0 : i32
    %c0_i32_1 = arith.constant 0 : i32
    return %c0_i32, %c0_i32_0 : i32, i32
  }
  func.func @transform_7(%arg0: i32) -> (i32, i32) {
    %c0_i32 = arith.constant 0 : i32
    %c0_i32_0 = arith.constant 0 : i32
    %c0_i32_1 = arith.constant 0 : i32
    return %c0_i32, %c0_i32_0 : i32, i32
  }
  func.func @transform_8(%arg0: i32) -> (i32, i32) {
    %c0_i32 = arith.constant 0 : i32
    %c0_i32_0 = arith.constant 0 : i32
    %c0_i32_1 = arith.constant 0 : i32
    return %c0_i32, %c0_i32_0 : i32, i32
  }
  func.func @transform_9(%arg0: i32) -> (i32, i32) {
    %c0_i32 = arith.constant 0 : i32
    %c0_i32_0 = arith.constant 0 : i32
    %c0_i32_1 = arith.constant 0 : i32
    return %c0_i32, %c0_i32_0 : i32, i32
  }
}

</mosaic_0001>

<bundles_post_ra>
// kernel: tpu_custom_call.1
= control target key start
LH: loop header
LB: loop body
LE: loop exit
PB: predicated region body
PF: predicated region fallthrough
CT: control target
= control target key end

     0   :  { %14 = vsyncpa [#allocation4], 0  ;;  %s1038_s30 = smov 0   ;;  %s1175_s0 = inlined_call_operand.vmem [shape: f32[32,32], index: 0, kind: input, shape index: {}]   ;;  %s1176_s1 = inlined_call_operand.hbm [shape: f32[32,32], index: 1, kind: input, shape index: {}]   ;;  %s1177_s2 = inlined_call_operand.vmem [shape: f32[1,32], index: 2, kind: input, shape index: {}]   ;;  %s1178_s3 = inlined_call_operand.vmem [shape: f32[1,32], index: 3, kind: input, shape index: {}]   ;;  %s1179_s4 = inlined_call_operand.vmem [shape: f32[32,16], index: 4, kind: input, shape index: {}]   ;;  %s1180_s5 = inlined_call_operand.vmem [shape: f32[1,16], index: 5, kind: input, shape index: {}]   ;;  %s1181_s6 = inlined_call_operand.vmem [shape: f32[1,16], index: 6, kind: input, shape index: {}]   ;;  %s1182_s7 = inlined_call_operand.vmem [shape: f32[16,16], index: 7, kind: input, shape index: {}]   ;;  %s1183_s8 = inlined_call_operand.vmem [shape: f32[1,16], index: 8, kind: input, shape index: {}]   ;;  %s1184_s9 = inlined_call_operand.vmem [shape: f32[32,16], index: 9, kind: output, shape index: {}]  }
   0x1 LB: > { %s1044_s10 = sadd.s32 4294967295, %s983_s30   ;;  %p823_p0 = scmp.ge.s32.totalorder %s983_s30, 1  ;;  %s983_s30 = sphi %s1038_s30, %s20_s30  }
   0x2   : > { %p240_p1 = scmp.lt.s32.totalorder %s983_s30, 3  ;;  %s985_s11 = smov [#allocation3]  }
   0x3   : > { %s252_s12 = sshll.u32 %s985_s11, 4  ;;  %p1185_p3 = scmp.eq.s32.totalorder %s1044_s10, 0  ;;  %s253_s12 = int_to_ptr.vmem [resolvable:$true] %s252_s12 }
   0x4   : > { %p1048_p2 = pnand %p823_p0, %p240_p1  ;;  %s945_s17 = scalar_lea.hbm %s1176_s1, 512 }
   0x5   : > { %p946_p6 = scmp.ne.s32.totalorder %s1176_s1, %s945_s17  ;;  %p952_p10 = scmp.lt.u32.totalorder %s945_s17, %s1176_s1 }
   0x6   : > { %s1187_s13 = scalar_select %p1048_p2, 1, 0 }
   0x7   : > { %p924_p4 = pneg %p1048_p2 }
   0x9   : > { %p1057_p5 = pnand %p1185_p3, %p924_p4 }
   0xb   : > { %p947_p7 = pneg %p1057_p5 }
   0xd   : > { %p948_p8 = pnand %p947_p7, %p946_p6 }
   0xf   : > { %p949_p9 = pneg %p948_p8 }
  0x11   : > { %p954_p11 = pnand %p952_p10, %p949_p9 }
  0x13   : > { %957 = shalt.err (!%p954_p11)
}
  0x14   : > { %s958_s22 = scalar_lea.vmem %s253_s12, 512  ;;  %p966_p1 = scmp.lt.s32.totalorder %s253_s12, %s253_s12 }
  0x15   : > { %p959_p12 = scmp.ne.s32.totalorder %s253_s12, %s958_s22  ;;  %p967_p4 = scmp.lt.s32.totalorder %s958_s22, %s958_s22 }
  0x17   : > { %p961_p13 = pnand %p959_p12, %p947_p7  ;;  %p968_p3 = por %p967_p4, %p966_p1 }
  0x19   : > { %p962_p0 = pneg %p961_p13 }
  0x1b   : > { %p969_p2 = pnand %p968_p3, %p962_p0 }
  0x1d   : > { %972 = shalt.err (!%p969_p2)
}
  0x1e   : > { %s986_s23 = smov 128   ;;  %s987_s24 = smov 8  }
  0x1f   : > { %927 = dma.hbm_to_vmem [thread:$0]  (!%p1057_p5), %s1176_s1, 512, %s253_s12, [#allocation4], %s986_s23, %s986_s23, %s987_s24  }
  0x20   : > { %p1189_p6 = scmp.ne.s32.totalorder %s1187_s13, 0 }
  0x21   : > { %p1190_p8 = scmp.eq.s32.totalorder (!%p1189_p6), %s1044_s10, 0 }
  0x22   : > { %298 = sbr.rel (%p1189_p6) target bundleno = 816 (0x330), region = 56 }
  0x29   : > { %978 = dma.done.wait (%p1190_p8), [#allocation4], 512   ;;  %p1191_p7 = pmov %p1190_p8 }
  0x2a   : > { %s828_s27 = sshll.u32 %s1044_s10, 1  ;;  %vm341_vm0 = vcmask 261120   ;;  %v337_v0 = vld [vmem:[#allocation3] sm:$0xff]  ;;  %v338_v1 = vld [vmem:[#allocation3 + $0x8] sm:$0xff]  ;;  %v339_v2 = vld [vmem:[#allocation3 + $0x10] sm:$0xff]  ;;  %s832_s12 = sshll.u32 %s1044_s10, 4 }
  0x2b   : > { %980 = vsyncadd (%p1191_p7), [#allocation4], 4294966784  ;;  %p330_p2 = scmp.lt.s32.totalorder %s828_s27, 3  ;;  %v900_v3 = vpack.c.bf16 %v338_v1, %v337_v0  ;;  %v340_v4 = vld [vmem:[#allocation3 + $0x18] sm:$0xff]  ;;  %s424_s13 = scalar_lea.vmem [#allocation2], %s832_s12 }
  0x2c   : > { %v904_v6 = vpack.c.bf16 %v340_v4, %v339_v2  ;;  %p833_p3 = scmp.ne.s32.totalorder %s1044_s10, 1 }
  0x2d   : > { %s1193_s27 = smov (!%p330_p2, %s828_s27), 3  ;;  %901 = vmatprep.subr.bf16.mxu0 %v900_v3  ;;  %v502_v10 = vld [vmem:[%s1179_s4] sm:$0xff] (!%p833_p3)  ;;  %v503_v11 = vld [vmem:[%s1179_s4 + $0x8] sm:$0xff] (!%p833_p3)  ;;  %v504_v12 = vld [vmem:[%s1179_s4 + $0x10] sm:$0xff] (!%p833_p3)  ;;  %v479_v56 = vlaneseq (!%p833_p3)  ;;  %vm605_vm1 = vcmask (!%p833_p3), 130048  }
  0x2e   : > { %s829_s28 = sshll.u32 %s1193_s27, 3  ;;  %903 = vmatpush3.bf16.msra.mxu0 %v900_v3  ;;  %v908_v13 = vpack.c.bf16 (!%p833_p3), %v503_v11, %v502_v10  ;;  %v505_v14 = vld [vmem:[%s1179_s4 + $0x18] sm:$0xff] (!%p833_p3)  ;;  %v435_v58 = vld [vmem:[%s1177_s2] sm:$0x1] (!%p833_p3) }
  0x2f   : > { %s333_s14 = scalar_lea.vmem %s1175_s0, %s829_s28  ;;  %905 = vmatprep.subr.bf16.mxu0 %v904_v6  ;;  %v912_v17 = vpack.c.bf16 (!%p833_p3), %v505_v14, %v504_v12  ;;  %v480_v57 = vshrl.u32 (!%p833_p3), %v479_v56, 7  ;;  %v436_v62 = vld [vmem:[%s1178_s3] sm:$0x1] (!%p833_p3) }
  0x30   : > { %v335_v5 = vld [vmem:[%s333_s14] sm:$0xff]  ;;  %v336_v7 = vld [vmem:[%s333_s14 + $0x8] sm:$0xff] }
  0x31   : > { %873 = vmatprep.mubr.msk.f32.mxu0 %vm341_vm0, %v335_v5  ;;  %v1116_v59 = vsub.s32 (!%p833_p3), 0, %v480_v57 }
  0x32   : > { %907 = vmatpush3.bf16.msra.mxu0 %v904_v6 }
  0x33   : > { %909 = vmatprep.subr.bf16.mxu0 (!%p833_p3), %v908_v13 }
  0x35   : > { %874 = vmatmul.mubr.msk.f32.vlgmr.msra.gmra.mrb[0].mxu0 %vm341_vm0, %v336_v7 }
  0x36   : > { %911 = vmatpush3.bf16.msra.mxu0 (!%p833_p3), %v908_v13 }
  0x37   : > { %913 = vmatprep.subr.bf16.mxu0 (!%p833_p3), %v912_v17 }
  0x3a   : > { %915 = vmatpush3.bf16.msra.mxu0 (!%p833_p3), %v912_v17 }
 0x104   : > { %430 = sbr.rel (%p833_p3) target bundleno = 816 (0x330), region = 64 }
 0x108   : > { %v875_v8 = vpop.f32.mrb[0].mxu0 }
 0x109   : > { %426 = vst.msk [vmem:[%s424_s13 + $0x8] sm:$0xff] %vm341_vm0, %v875_v8  ;;  %v414_v9 = vpop.f32.mrb[1].mxu0 }
 0x10a   : > { %425 = vst.msk [vmem:[%s424_s13] sm:$0xff] %vm341_vm0, %v414_v9 }
 0x111   : > { %v431_v15 = vld [vmem:[#allocation2] sm:$0xff]  ;;  %v432_v16 = vld [vmem:[#allocation2 + $0x8] sm:$0xff]  ;;  %v433_v18 = vld [vmem:[#allocation2 + $0x10] sm:$0xff] }
 0x112   : > { %v434_v19 = vld [vmem:[#allocation2 + $0x18] sm:$0xff]  ;;  %v437_v20 = vsel %vm341_vm0, %v431_v15, 0.0  ;;  %v438_v21 = vsel %vm341_vm0, %v432_v16, 0.0  ;;  %v452_v22 = vmul.f32 %v431_v15, %v431_v15  ;;  %v440_v24 = vsel %vm341_vm0, %v433_v18, 0.0 }
 0x113   : > { %v439_v23 = vadd.f32 %v438_v21, %v437_v20  ;;  %v453_v25 = vmul.f32 %v432_v16, %v432_v16  ;;  %v442_v26 = vsel %vm341_vm0, %v434_v19, 0.0  ;;  %v454_v27 = vmul.f32 %v433_v18, %v433_v18 }
 0x114   : > { %v455_v28 = vmul.f32 %v434_v19, %v434_v19  ;;  %v456_v29 = vsel %vm341_vm0, %v452_v22, 0.0 }
 0x115   : > { %v441_v30 = vadd.f32 %v440_v24, %v439_v23  ;;  %v457_v31 = vsel %vm341_vm0, %v453_v25, 0.0  ;;  %v459_v33 = vsel %vm341_vm0, %v454_v27, 0.0 }
 0x116   : > { %v458_v32 = vadd.f32 %v457_v31, %v456_v29  ;;  %v461_v35 = vsel %vm341_vm0, %v455_v28, 0.0 }
 0x117   : > { %v443_v34 = vadd.f32 %v442_v26, %v441_v30 }
 0x118   : > { %v460_v36 = vadd.f32 %v459_v33, %v458_v32 }
 0x119   : > { %v444_v37 = vrot.slane %v443_v34, 4 }
 0x11a   : > { %v462_v38 = vadd.f32 %v461_v35, %v460_v36 }
 0x11b   : > { %v445_v39 = vadd.f32 %v444_v37, %v443_v34 }
 0x11c   : > { %v463_v40 = vrot.slane %v462_v38, 4 }
 0x11d   : > { %v446_v41 = vrot.slane %v445_v39, 2 }
 0x11e   : > { %v464_v42 = vadd.f32 %v463_v40, %v462_v38 }
 0x11f   : > { %v447_v43 = vadd.f32 %v446_v41, %v445_v39 }
 0x120   : > { %v465_v44 = vrot.slane %v464_v42, 2 }
 0x121   : > { %v448_v45 = vrot.slane %v447_v43, 1 }
 0x122   : > { %v466_v46 = vadd.f32 %v465_v44, %v464_v42 }
 0x123   : > { %v449_v47 = vadd.f32 %v448_v45, %v447_v43 }
 0x124   : > { %v467_v48 = vrot.slane %v466_v46, 1 }
 0x125   : > { %v451_v49 = vmul.f32 0.03125, %v449_v47 }
 0x126   : > { %v468_v50 = vadd.f32 %v467_v48, %v466_v46 }
 0x127   : > { %v470_v51 = vmul.f32 %v451_v49, %v451_v49 }
 0x128   : > { %v469_v52 = vmul.f32 0.03125, %v468_v50 }
 0x12a   : > { %v471_v53 = vsub.f32 %v469_v52, %v470_v51 }
 0x12c   : > { %v472_v54 = vmax.f32 %v471_v53, 0.0 }
 0x12e   : > { %v473_v55 = vadd.f32 1e-05, %v472_v54 }
 0x130   : > { %941 = vrsqrt.f32 %v473_v55 }
 0x13a   : > { %v942_v60 = vpop.eup %941 }
 0x13b   : > { %v475_v61 = vmul.f32 %v942_v60, %v435_v58  ;;  %v603_v58 = vld [vmem:[%s1180_s5] sm:$0x1] }
 0x13d   : > { %v476_v63 = vmul.f32 %v475_v61, %v451_v49  ;;  %v482_v0 = vrot.slane %v475_v61, %v1116_v59 }
 0x13f   : > { %v477_v1 = vsub.f32 %v436_v62, %v476_v63  ;;  %v484_v2 = vmul.f32 %v482_v0, %v431_v15  ;;  %v485_v3 = vmul.f32 %v482_v0, %v432_v16  ;;  %v486_v4 = vmul.f32 %v482_v0, %v433_v18  ;;  %v670_v15 = vld [vmem:[%s1182_s7] sm:$0xff]  ;;  %v671_v16 = vld [vmem:[%s1182_s7 + $0x8] sm:$0xff] }
 0x140   : > { %v487_v5 = vmul.f32 %v482_v0, %v434_v19  ;;  %v916_v17 = vpack.c.bf16 %v671_v16, %v670_v15  ;;  %v604_v62 = vld [vmem:[%s1181_s6] sm:$0x1] }
 0x141   : > { %v492_v6 = vrot.slane %v477_v1, %v1116_v59 }
 0x142   : > { %917 = vmatprep.subr.bf16.mxu1 %v916_v17 }
 0x143   : > { %v494_v7 = vadd.f32 %v492_v6, %v484_v2  ;;  %v495_v8 = vadd.f32 %v492_v6, %v485_v3  ;;  %v496_v9 = vadd.f32 %v492_v6, %v486_v4  ;;  %v497_v10 = vadd.f32 %v492_v6, %v487_v5  ;;  %919 = vmatpush3.bf16.msra.mxu1 %v916_v17 }
 0x145   : > { %v498_v11 = vmax.f32 %v494_v7, 0.0  ;;  %v499_v12 = vmax.f32 %v495_v8, 0.0  ;;  %v500_v13 = vmax.f32 %v496_v9, 0.0  ;;  %v501_v14 = vmax.f32 %v497_v10, 0.0 }
 0x147   : > { %884 = vmatprep.mubr.msk.f32.mxu0 %vm341_vm0, %v498_v11 }
 0x148   : > { %885 = vmatmul.mubr.msk.f32.vlgmr.msra.gmra.mrb[0].mxu0 %vm341_vm0, %v499_v12 }
 0x149   : > { %887 = vmatprep.mubr.msk.f32.mxu0 %vm341_vm0, %v500_v13 }
 0x14c   : > { %888 = vmatmul.mubr.msk.f32.gmra.mrb[2].mxu0 %vm341_vm0, %v501_v14 }
 0x21b   : > { %v886_v18 = vpop.f32.mrb[0].mxu0 }
 0x21c   : > { %v607_v19 = vsel %vm605_vm1, %v886_v18, 0.0  ;;  %v621_v20 = vmul.f32 %v886_v18, %v886_v18  ;;  %v584_v21 = vpop.f32.mrb[1].mxu0 }
 0x21d   : > { %v606_v22 = vsel %vm605_vm1, %v584_v21, 0.0  ;;  %v620_v23 = vmul.f32 %v584_v21, %v584_v21 }
 0x21e   : > { %v625_v24 = vsel %vm605_vm1, %v621_v20, 0.0  ;;  %v608_v25 = vadd.f32 %v607_v19, %v606_v22 }
 0x21f   : > { %v624_v26 = vsel %vm605_vm1, %v620_v23, 0.0  ;;  %v889_v27 = vpop.f32.mrb[2].mxu0 }
 0x220   : > { %v626_v28 = vadd.f32 %v625_v24, %v624_v26  ;;  %v594_v29 = vpop.f32.mrb[3].mxu0  ;;  %v623_v30 = vmul.f32 %v889_v27, %v889_v27  ;;  %v611_v34 = vsel %vm605_vm1, %v889_v27, 0.0 }
 0x221   : > { %v609_v31 = vsel %vm605_vm1, %v594_v29, 0.0  ;;  %v622_v32 = vmul.f32 %v594_v29, %v594_v29 }
 0x222   : > { %v610_v33 = vadd.f32 %v609_v31, %v608_v25  ;;  %v629_v38 = vsel %vm605_vm1, %v623_v30, 0.0 }
 0x223   : > { %v627_v35 = vsel %vm605_vm1, %v622_v32, 0.0 }
 0x224   : > { %v612_v36 = vadd.f32 %v611_v34, %v610_v33  ;;  %v628_v37 = vadd.f32 %v627_v35, %v626_v28 }
 0x226   : > { %v613_v39 = vrot.slane %v612_v36, 4  ;;  %v630_v40 = vadd.f32 %v629_v38, %v628_v37 }
 0x228   : > { %v614_v41 = vadd.f32 %v613_v39, %v612_v36  ;;  %v631_v42 = vrot.slane %v630_v40, 4 }
 0x22a   : > { %v615_v43 = vrot.slane %v614_v41, 2  ;;  %v632_v44 = vadd.f32 %v631_v42, %v630_v40 }
 0x22c   : > { %v616_v45 = vadd.f32 %v615_v43, %v614_v41  ;;  %v633_v46 = vrot.slane %v632_v44, 2 }
 0x22e   : > { %v617_v47 = vrot.slane %v616_v45, 1  ;;  %v634_v48 = vadd.f32 %v633_v46, %v632_v44 }
 0x230   : > { %v618_v49 = vadd.f32 %v617_v47, %v616_v45  ;;  %v635_v50 = vrot.slane %v634_v48, 1 }
 0x232   : > { %v619_v51 = vmul.f32 0.03125, %v618_v49  ;;  %v636_v52 = vadd.f32 %v635_v50, %v634_v48 }
 0x234   : > { %v637_v53 = vmul.f32 0.03125, %v636_v52  ;;  %v638_v54 = vmul.f32 %v619_v51, %v619_v51 }
 0x236   : > { %v639_v55 = vsub.f32 %v637_v53, %v638_v54 }
 0x238   : > { %v640_v56 = vmax.f32 %v639_v55, 0.0 }
 0x23a   : > { %v641_v57 = vadd.f32 1e-05, %v640_v56 }
 0x23c   : > { %943 = vrsqrt.f32 %v641_v57 }
 0x246   : > { %v944_v60 = vpop.eup %943 }
 0x247   : > { %v643_v61 = vmul.f32 %v944_v60, %v603_v58 }
 0x249   : > { %v644_v63 = vmul.f32 %v643_v61, %v619_v51  ;;  %v650_v0 = vrot.slane %v643_v61, %v1116_v59 }
 0x24b   : > { %v645_v1 = vsub.f32 %v604_v62, %v644_v63  ;;  %v654_v2 = vmul.f32 %v650_v0, %v594_v29  ;;  %v652_v3 = vmul.f32 %v650_v0, %v584_v21  ;;  %v653_v4 = vmul.f32 %v886_v18, %v650_v0 }
 0x24c   : > { %v655_v5 = vmul.f32 %v889_v27, %v650_v0 }
 0x24d   : > { %v660_v6 = vrot.slane %v645_v1, %v1116_v59  ;;  %v838_v59 = vld [vmem:[%s1183_s8] ss:$0 sm:$0xff] }
 0x24f   : > { %v664_v7 = vadd.f32 %v660_v6, %v654_v2  ;;  %v662_v8 = vadd.f32 %v660_v6, %v652_v3  ;;  %v663_v9 = vadd.f32 %v660_v6, %v653_v4  ;;  %v665_v10 = vadd.f32 %v660_v6, %v655_v5 }
 0x251   : > { %v666_v11 = vmax.f32 %v662_v8, 0.0  ;;  %v667_v12 = vmax.f32 %v663_v9, 0.0  ;;  %v668_v13 = vmax.f32 %v664_v7, 0.0  ;;  %v669_v14 = vmax.f32 %v665_v10, 0.0 }
 0x253   : > { %894 = vmatprep.mubr.msk.f32.mxu1 %vm605_vm1, %v666_v11 }
 0x254   : > { %895 = vmatmul.mubr.msk.f32.vlgmr.msra.gmra.mrb[0].mxu1 %vm605_vm1, %v667_v12 }
 0x255   : > { %897 = vmatprep.mubr.msk.f32.mxu1 %vm605_vm1, %v668_v13 }
 0x258   : > { %898 = vmatmul.mubr.msk.f32.gmra.mrb[2].mxu1 %vm605_vm1, %v669_v14 }
 0x327   : > { %v896_v15 = vpop.f32.mrb[0].mxu1 }
 0x328   : > { %v763_v16 = vadd.f32 %v896_v15, %v838_v59  ;;  %v757_v17 = vpop.f32.mrb[1].mxu1 }
 0x329   : > { %v758_v18 = vadd.f32 %v838_v59, %v757_v17 }
 0x32a   : > { %777 = vst.msk [vmem:[%s1184_s9 + $0x8] sm:$0xff] %vm605_vm1, %v763_v16 }
 0x32b   : > { %776 = vst.msk [vmem:[%s1184_s9] sm:$0xff] %vm605_vm1, %v758_v18  ;;  %v899_v19 = vpop.f32.mrb[2].mxu1 }
 0x32c   : > { %v773_v20 = vadd.f32 %v899_v19, %v838_v59  ;;  %v767_v21 = vpop.f32.mrb[3].mxu1 }
 0x32d   : > { %v768_v22 = vadd.f32 %v838_v59, %v767_v21 }
 0x32e   : > { %779 = vst.msk [vmem:[%s1184_s9 + $0x18] sm:$0xff] %vm605_vm1, %v773_v20 }
 0x32f   : > { %778 = vst.msk [vmem:[%s1184_s9 + $0x10] sm:$0xff] %vm605_vm1, %v768_v22 }
 0x330 PF: > { %s20_s30 = sadd.s32 1, %s983_s30  }
 0x331   : > { %p17_p5 = scmp.ge.s32.totalorder %s20_s30, 4  }
 0x333   :  { %19 = sbr.rel (!%p17_p5) target bundleno = 1 (0x1), region = 92 }
 0x33a   :  { %791 = vsyncpa [#allocation4], 1 }
 0x33b   :  { %793 = vsyncpa [#allocation4 + $0x1], 1 }

</bundles_post_ra>
